<compile_context>
chip_gen: v5e
topology: v5e:2x2
jax: 0.10.0
libtpu: 0.0.40
codegen_flags: <defaults>
</compile_context>

<pallas_src>
import jax
import jax.numpy as jnp
from jax.experimental import pallas as pl
from jax.experimental.pallas import tpu as pltpu


def logreg_kernel(x_ref, w_ref, b_ref, o_ref, acc_ref):
    # x: (TB, TF), w: (1, TF), b: (1,) in SMEM, o: (TB, 1), acc: (TB, 1) f32
    k = pl.program_id(1)

    @pl.when(k == 0)
    def _init():
        acc_ref[...] = jnp.zeros_like(acc_ref)

    x = x_ref[...].astype(jnp.float32)
    w = w_ref[...].astype(jnp.float32)
    # VPU broadcast-multiply + XLU lane reduce (no MXU N=1 matvec).
    acc_ref[...] += jnp.sum(x * w, axis=-1, keepdims=True)

    @pl.when(k == pl.num_programs(1) - 1)
    def _finalize():
        z = acc_ref[...] + b_ref[0]
        o_ref[...] = jax.nn.sigmoid(z).astype(o_ref.dtype)


def _pick_feature_tile(F, tf_max):
    """Feature tile: F itself when small, else a multiple of 128 dividing F."""
    if F <= tf_max:
        return F
    cand = (tf_max // 128) * 128
    while cand >= 128:
        if F % cand == 0:
            return cand
        cand -= 128
    return F  # fallback: full-width block (rare: large F with no 128-divisor)


def logistic_regression_forward(x, weight, bias, *, tb_max=1024, tf_max=1024):
    """x: (B, F); weight: (1, F) (nn.Linear layout); bias: (1,)."""
    B, F = x.shape
    w = weight.reshape(1, F)
    b = bias.reshape(1).astype(jnp.float32)

    # Batch tile: full B when small, else a multiple-of-8 tile (padded tail
    # rows are masked on the output store).
    tb = B if B <= tb_max else tb_max
    tf = _pick_feature_tile(F, tf_max)

    grid = (pl.cdiv(B, tb), pl.cdiv(F, tf))

    return pl.pallas_call(
        logreg_kernel,
        out_shape=jax.ShapeDtypeStruct((B, 1), jnp.float32),
        grid_spec=pltpu.PrefetchScalarGridSpec(
            num_scalar_prefetch=0,
            grid=grid,
            in_specs=[
                # x: tile batch (parallel) and features (reduction).
                pl.BlockSpec((tb, tf), lambda i, k: (i, k)),
                # weight: same feature tile, broadcast over batch tiles.
                pl.BlockSpec((1, tf), lambda i, k: (0, k)),
                # bias: scalar in SMEM, no VMEM tile / double-buffering.
                pl.BlockSpec(memory_space=pltpu.MemorySpace.SMEM),
            ],
            out_specs=pl.BlockSpec((tb, 1), lambda i, k: (i, 0)),
            scratch_shapes=[pltpu.VMEM((tb, 1), jnp.float32)],
        ),
        compiler_params=pltpu.CompilerParams(
            dimension_semantics=("parallel", "arbitrary"),
        ),
    )(x, w, b)


if __name__ == "__main__":
    key = jax.random.PRNGKey(0)
    kx, kw, kb = jax.random.split(key, 3)

    batch = 8
    num_of_features = 32

    x = jax.random.normal(kx, (batch, num_of_features), dtype=jnp.float32)
    # Deterministic parameter init (mimics nn.Linear uniform(-1/sqrt(F), 1/sqrt(F)))
    bound = 1.0 / jnp.sqrt(num_of_features)
    weight = jax.random.uniform(
        kw, (1, num_of_features), minval=-bound, maxval=bound, dtype=jnp.float32
    )
    bias = jax.random.uniform(kb, (1,), minval=-bound, maxval=bound, dtype=jnp.float32)

    y = logistic_regression_forward(x, weight, bias)
    y = jax.block_until_ready(y)

    # Reference check in plain JAX
    y_ref = jax.nn.sigmoid(x @ weight.T + bias)
    assert y.shape == (batch, 1)
    assert jnp.allclose(y, y_ref, atol=1e-5, rtol=1e-5), "mismatch vs reference"

    print("KERNEL_OK")
</pallas_src>

<mosaic_0001>
module attributes {stable_mosaic.version = 11 : i64} {
  func.func @logreg_kernel(%arg0: i32, %arg1: i32, %arg2: memref<8x32xf32, #tpu.memory_space<vmem>>, %arg3: memref<1x32xf32, #tpu.memory_space<vmem>>, %arg4: memref<1xf32, #tpu.memory_space<smem>>, %arg5: memref<8x1xf32, #tpu.memory_space<vmem>>, %arg6: memref<8x1xf32, #tpu.memory_space<vmem>>) attributes {dimension_semantics = [#tpu.dimension_semantics<parallel>, #tpu.dimension_semantics<arbitrary>], iteration_bounds = array<i64: 1, 1>, scalar_prefetch = 0 : i64, scratch_operands = 1 : i64, tpu.core_type = #tpu.core_type<tc>, window_params = [{transform_indices = @transform_0, window_bounds = array<i64: 8, 32>}, {transform_indices = @transform_1, window_bounds = array<i64: 1, 32>}, {transform_indices = @transform_2, window_bounds = array<i64: 1>}, {transform_indices = @transform_3, window_bounds = array<i64: 8, 1>}]} {
    %c0_i32 = arith.constant 0 : i32
    %0 = arith.cmpi eq, %arg1, %c0_i32 : i32
    %1 = arith.extui %0 : i1 to i32
    %c0_i32_0 = arith.constant 0 : i32
    %2 = arith.cmpi ne, %1, %c0_i32_0 : i32
    scf.if %2 {
      %cst_10 = arith.constant 0.000000e+00 : f32
      %15 = vector.broadcast %cst_10 : f32 to vector<8x1xf32>
      %c0_11 = arith.constant 0 : index
      %c0_12 = arith.constant 0 : index
      %16 = vector.load %arg6[%c0_11, %c0_12] : memref<8x1xf32, #tpu.memory_space<vmem>>, vector<8x1xf32>
      tpu.vector_store %arg6[%c0_11, %c0_12], %15 {strides = array<i32>} : memref<8x1xf32, #tpu.memory_space<vmem>>, vector<8x1xf32>,
    } else {
    }
    %c0 = arith.constant 0 : index
    %c0_1 = arith.constant 0 : index
    %3 = vector.load %arg2[%c0, %c0_1] : memref<8x32xf32, #tpu.memory_space<vmem>>, vector<8x32xf32>
    %c0_2 = arith.constant 0 : index
    %c0_3 = arith.constant 0 : index
    %4 = vector.load %arg3[%c0_2, %c0_3] : memref<1x32xf32, #tpu.memory_space<vmem>>, vector<1x32xf32>
    %c0_4 = arith.constant 0 : index
    %c0_5 = arith.constant 0 : index
    %5 = vector.load %arg6[%c0_4, %c0_5] : memref<8x1xf32, #tpu.memory_space<vmem>>, vector<8x1xf32>
    %6 = vector.broadcast %4 : vector<1x32xf32> to vector<8x32xf32>
    %7 = arith.mulf %3, %6 : vector<8x32xf32>
    %cst = arith.constant dense<0.000000e+00> : vector<8xf32>
    %8 = vector.multi_reduction <add>, %7, %cst [1] : vector<8x32xf32> to vector<8xf32>
    %9 = vector.shape_cast %8 : vector<8xf32> to vector<8x1xf32>
    %10 = arith.addf %5, %9 : vector<8x1xf32>
    %c0_6 = arith.constant 0 : index
    %c0_7 = arith.constant 0 : index
    %11 = vector.load %arg6[%c0_6, %c0_7] : memref<8x1xf32, #tpu.memory_space<vmem>>, vector<8x1xf32>
    tpu.vector_store %arg6[%c0_6, %c0_7], %10 {strides = array<i32>} : memref<8x1xf32, #tpu.memory_space<vmem>>, vector<8x1xf32>,
    %c0_i32_8 = arith.constant 0 : i32
    %12 = arith.cmpi eq, %arg1, %c0_i32_8 : i32
    %13 = arith.extui %12 : i1 to i32
    %c0_i32_9 = arith.constant 0 : i32
    %14 = arith.cmpi ne, %13, %c0_i32_9 : i32
    scf.if %14 {
      %c0_10 = arith.constant 0 : index
      %c0_11 = arith.constant 0 : index
      %15 = vector.load %arg6[%c0_10, %c0_11] : memref<8x1xf32, #tpu.memory_space<vmem>>, vector<8x1xf32>
      %c0_12 = arith.constant 0 : index
      %16 = memref.load %arg4[%c0_12] : memref<1xf32, #tpu.memory_space<smem>>
      %17 = vector.broadcast %16 : f32 to vector<8x1xf32>
      %18 = arith.addf %15, %17 : vector<8x1xf32>
      %19 = arith.negf %18 : vector<8x1xf32>
      %20 = math.exp %19 : vector<8x1xf32>
      %cst_13 = arith.constant 1.000000e+00 : f32
      %21 = vector.broadcast %cst_13 : f32 to vector<8x1xf32>
      %22 = arith.addf %21, %20 : vector<8x1xf32>
      %23 = arith.divf %21, %22 : vector<8x1xf32>
      %c0_14 = arith.constant 0 : index
      %c0_15 = arith.constant 0 : index
      %24 = vector.load %arg5[%c0_14, %c0_15] : memref<8x1xf32, #tpu.memory_space<vmem>>, vector<8x1xf32>
      tpu.vector_store %arg5[%c0_14, %c0_15], %23 {strides = array<i32>} : memref<8x1xf32, #tpu.memory_space<vmem>>, vector<8x1xf32>,
    } else {
    }
    return
  }
  func.func @transform_0(%arg0: i32, %arg1: i32) -> (i32, i32) {
    %c0_i32 = arith.constant 0 : i32
    return %arg0, %arg1 : i32, i32
  }
  func.func @transform_1(%arg0: i32, %arg1: i32) -> (i32, i32) {
    %c0_i32 = arith.constant 0 : i32
    %c0_i32_0 = arith.constant 0 : i32
    return %c0_i32, %arg1 : i32, i32
  }
  func.func @transform_2(%arg0: i32, %arg1: i32) -> i32 {
    %c0_i32 = arith.constant 0 : i32
    %c0_i32_0 = arith.constant 0 : i32
    return %c0_i32 : i32
  }
  func.func @transform_3(%arg0: i32, %arg1: i32) -> (i32, i32) {
    %c0_i32 = arith.constant 0 : i32
    %c0_i32_0 = arith.constant 0 : i32
    return %arg0, %c0_i32 : i32, i32
  }
}

</mosaic_0001>

<bundles_post_ra>
// kernel: tpu_custom_call.1
= control target key start
LH: loop header
LB: loop body
LE: loop exit
PB: predicated region body
PF: predicated region fallthrough
CT: control target
= control target key end

     0   :  { %9 = vsyncpa [#allocation5], 0  ;;  %s115_s15 = smov [#allocation4]   ;;  %s152_s0 = inlined_call_operand.hbm [shape: f32[8,32], index: 0, kind: input, shape index: {}]   ;;  %s153_s1 = inlined_call_operand.vmem [shape: f32[1,32], index: 1, kind: input, shape index: {}]   ;;  %s154_s2 = inlined_call_operand.<no memory space> [shape: f32[1], index: 2, kind: input, shape index: {}]   ;;  %s155_s3 = inlined_call_operand.vmem [shape: f32[8,1], index: 3, kind: output, shape index: {}]  }
   0x1   :  { %s15_s14 = sshll.u32 %s152_s0, 4  ;;  %s17_s16 = sshll.u32 %s115_s15, 4  ;;  %s16_s14 = int_to_ptr.hbm [resolvable:$true] %s15_s14  ;;  %s18_s16 = int_to_ptr.vmem [resolvable:$true] %s17_s16 }
   0x2   :  { %20 = dma.hbm_to_vmem [thread:$0]  %s16_s14, 128, %s18_s16, [#allocation5]  }
   0x3   :  { %113 = dma.done.wait [#allocation5], 128  }
   0x4   :  { %114 = vsyncadd [#allocation5], 4294967168  ;;  %vm33_vm0 = vcmask 7168   ;;  %v116_v0 = vmov 0.0   ;;  %v35_v1 = vld [vmem:[#allocation4] sm:$0xff]  ;;  %vm42_vm1 = vcmask 261120   ;;  %v54_v8 = vstv %s154_s2 }
   0x5   :  { %34 = vst.msk [vmem:[#allocation2] sm:$0xff] %vm33_vm0, %v116_v0  ;;  %v84_v2 = vld [vmem:[%s153_s1] ss:$0 sm:$0xff] }
   0x6   :  { %v41_v3 = vmul.f32 %v84_v2, %v35_v1 }
   0x8   :  { %v43_v4 = vsel %vm42_vm1, %v41_v3, 0.0 }
   0x9   :  { %44 = vadd.xlane.f32.xlu0 %v43_v4 }
   0xc   :  { %v37_v5 = vld [vmem:[#allocation2] sm:$0xff] }
  0x7c   :  { %v45_v6 = vpop.xlane.xlu0 %44 }
  0x7d   :  { %v46_v7 = vadd.f32 %v45_v6, %v37_v5 }
  0x7f   :  { %48 = vst.msk [vmem:[#allocation2] sm:$0xff] %vm33_vm0, %v46_v7 }
  0x86   :  { %v52_v9 = vld [vmem:[#allocation2] sm:$0xff] }
  0x87   :  { %v55_v10 = vadd.f32 %v54_v8, %v52_v9 }
  0x89   :  { %v81_v11 = vmul.f32 -1.442695, %v55_v10 }
  0x8b   :  { %85 = vpow2.f32 %v81_v11 }
  0x91   :  { %v86_v12 = vpop.eup %85 }
  0x92   :  { %v59_v13 = vadd.f32 1.0, %v86_v12 }
  0x94   :  { %87 = vrcp.f32 %v59_v13  ;;  %v71_v17 = vand.u32 2147483648, %v59_v13  ;;  %v69_v19 = vand.u32 2147483647, %v59_v13  ;;  %vm65_vm3 = vweird.f32 %v59_v13 }
  0x96   :  { %v72_v21 = vor.u32 1.1754944e-38, %v71_v17  ;;  %vm70_vm5 = vcmp.eq.f32.partialorder %v69_v19, 8.507059e+37 }
  0x9a   :  { %v88_v14 = vpop.eup %87 }
  0x9b   :  { %v61_v15 = vmul.f32 %v88_v14, %v59_v13  ;;  %vm66_vm2 = vweird.f32 %v88_v14 }
  0x9c   :  { %vm67_vm4 = vmor %vm65_vm3, %vm66_vm2 }
  0x9d   :  { %v62_v16 = vsub.f32 1.0, %v61_v15 }
  0x9f   :  { %v63_v18 = vmul.f32 %v88_v14, %v62_v16 }
  0xa1   :  { %v64_v20 = vadd.f32 %v88_v14, %v63_v18 }
  0xa3   :  { %v68_v22 = vsel %vm67_vm4, %v88_v14, %v64_v20 }
  0xa4   :  { %v73_v23 = vsel %vm70_vm5, %v72_v21, %v68_v22 }
  0xa5   :  { %75 = vst.msk [vmem:[%s155_s3] sm:$0xff] %vm33_vm0, %v73_v23 }
  0xa6   :  { %80 = vsyncpa [#allocation5], 1 }

</bundles_post_ra>
